<compile_context>
chip_gen: v5e
topology: v5e:2x2
jax: 0.10.0
libtpu: 0.0.40
codegen_flags: <defaults>
</compile_context>

<pallas_src>
import jax
import jax.numpy as jnp
from jax.experimental import pallas as pl
from jax.experimental.pallas import tpu as pltpu

# ----------------------------- small config ---------------------------------
BATCH = 2
SEQ = 8
KNOWLEDGE_DIM = 32  # config.knowledge_representation_dim

_LANES = 128
_TILE_ROWS = 512  # only used for large (production-sized) inputs


# ------------------------------ kernel ---------------------------------------
def cast_f32_kernel(x_ref, o_ref):
    """float() cast of torch.stack(...) — the only compute in this module."""
    o_ref[...] = x_ref[...].astype(jnp.float32)


# --------------------------- pallas_call wrappers -----------------------------
def _lane_dense(x):
    """Reshape to a lane-dense (rows, 128) 2-D view when possible (layout only)."""
    if x.size % _LANES == 0:
        return x.reshape(-1, _LANES)
    return x.reshape(1, -1)  # fallback: still correct, just masked stores


def _cast_to_f32(x2d):
    rows, cols = x2d.shape
    if cols == _LANES and rows >= 2 * _TILE_ROWS and rows % _TILE_ROWS == 0:
        # Production-sized input: row-tiled grid, sharded across TensorCores.
        return pl.pallas_call(
            cast_f32_kernel,
            out_shape=jax.ShapeDtypeStruct((rows, cols), jnp.float32),
            grid=(rows // _TILE_ROWS,),
            in_specs=[pl.BlockSpec((_TILE_ROWS, cols), lambda i: (i, 0))],
            out_specs=pl.BlockSpec((_TILE_ROWS, cols), lambda i: (i, 0)),
            compiler_params=pltpu.CompilerParams(
                dimension_semantics=("parallel",)),
        )(x2d)
    # Small input: gridless call, whole array lives in VMEM, no pipeline
    # prologue, no double buffering.
    return pl.pallas_call(
        cast_f32_kernel,
        out_shape=jax.ShapeDtypeStruct((rows, cols), jnp.float32),
        in_specs=[pl.BlockSpec(memory_space=pltpu.MemorySpace.VMEM)],
        out_specs=pl.BlockSpec(memory_space=pltpu.MemorySpace.VMEM),
    )(x2d)


def no_embedding(knowledge):
    """JAX/Pallas equivalent of NoEmbedding.forward."""
    if isinstance(knowledge, (list, tuple)):
        # torch.stack(knowledge): one contiguous XLA concatenate in the wrapper
        # (one transfer instead of N tiny per-element DMAs into the kernel).
        stacked = jnp.stack([jnp.asarray(t) for t in knowledge])
        out = _cast_to_f32(_lane_dense(stacked))  # fused .float() in Pallas
        return out.reshape(stacked.shape)
    # Tensor path: knowledge.to(device) — placement only, zero bytes moved.
    return knowledge


# ------------------------------ main ------------------------------------------
if __name__ == "__main__":
    key = jax.random.PRNGKey(0)
    k1, k2 = jax.random.split(key)

    # Path 1: `knowledge` is already a tensor -> pass-through (dtype preserved).
    knowledge_tensor = jax.random.normal(
        k1, (BATCH, SEQ, KNOWLEDGE_DIM), dtype=jnp.float32)
    out_a = jax.block_until_ready(no_embedding(knowledge_tensor))
    assert out_a.shape == (BATCH, SEQ, KNOWLEDGE_DIM)
    assert out_a.dtype == knowledge_tensor.dtype
    assert bool(jnp.allclose(out_a, knowledge_tensor))

    # Path 2: `knowledge` is a list of tensors -> stack + float cast (Pallas).
    elem_keys = jax.random.split(k2, BATCH)
    knowledge_list = [
        jax.random.normal(elem_keys[i], (SEQ, KNOWLEDGE_DIM), dtype=jnp.bfloat16)
        for i in range(BATCH)
    ]
    out_b = jax.block_until_ready(no_embedding(knowledge_list))
    ref_b = jnp.stack(knowledge_list).astype(jnp.float32)
    assert out_b.shape == (BATCH, SEQ, KNOWLEDGE_DIM)
    assert out_b.dtype == jnp.float32
    assert bool(jnp.allclose(out_b, ref_b))
    assert bool(jnp.all(jnp.isfinite(out_b)))

    print("KERNEL_OK")
</pallas_src>

<mosaic_0001>
module attributes {stable_mosaic.version = 11 : i64} {
  func.func @cast_f32_kernel(%arg0: memref<4x128xbf16, #tpu.memory_space<vmem>>, %arg1: memref<4x128xf32, #tpu.memory_space<vmem>>) attributes {dimension_semantics = [], scalar_prefetch = 0 : i64, scratch_operands = 0 : i64, tpu.core_type = #tpu.core_type<tc>} {
    %c0 = arith.constant 0 : index
    %c0_0 = arith.constant 0 : index
    %0 = vector.load %arg0[%c0, %c0_0] : memref<4x128xbf16, #tpu.memory_space<vmem>>, vector<4x128xbf16>
    %1 = arith.extf %0 : vector<4x128xbf16> to vector<4x128xf32>
    %c0_1 = arith.constant 0 : index
    %c0_2 = arith.constant 0 : index
    %2 = vector.load %arg1[%c0_1, %c0_2] : memref<4x128xf32, #tpu.memory_space<vmem>>, vector<4x128xf32>
    tpu.vector_store %arg1[%c0_1, %c0_2], %1 {strides = array<i32>} : memref<4x128xf32, #tpu.memory_space<vmem>>, vector<4x128xf32>,
    return
  }
}

</mosaic_0001>

<bundles_post_ra>
// kernel: tpu_custom_call.1
= control target key start
LH: loop header
LB: loop body
LE: loop exit
PB: predicated region body
PF: predicated region fallthrough
CT: control target
= control target key end

     0   :  { %6 = vsyncpa [#allocation3], 0  ;;  %s115_s0 = inlined_call_operand.hbm [shape: bf16[4,128], index: 0, kind: input, shape index: {}]   ;;  %s116_s1 = inlined_call_operand.hbm [shape: f32[4,128], index: 1, kind: output, shape index: {}]  }
   0x1   :  { %7 = vsyncpa [#allocation4], 0  ;;  %s13_s8 = sshll.u32 %s115_s0, 4  ;;  %s97_s9 = smov [#allocation2]   ;;  %s14_s8 = int_to_ptr.hbm [resolvable:$true] %s13_s8 }
   0x2   :  { %s15_s10 = sshll.u32 %s97_s9, 4  ;;  %s16_s10 = int_to_ptr.vmem [resolvable:$true] %s15_s10 }
   0x3   :  { %18 = dma.hbm_to_vmem [thread:$0]  %s14_s8, 32, %s16_s10, [#allocation3]  }
   0x4   :  { %93 = dma.done.wait [#allocation3], 32  }
   0x5   :  { %94 = vsyncadd [#allocation3], 4294967264  ;;  %s98_s11 = smov [#allocation5]   ;;  %s33_s15 = sshll.u32 %s116_s1, 4  ;;  %v23_v0 = vld [vmem:[#allocation2] sm:$0x3]  ;;  %s34_s15 = int_to_ptr.hbm [resolvable:$true] %s33_s15 }
   0x6   :  { %s31_s12 = sshll.u32 %s98_s11, 4  ;;  %v24_v1 = vunpack.c.l.bf16 %v23_v0  ;;  %s32_s12 = int_to_ptr.vmem [resolvable:$true] %s31_s12 }
   0x8   :  { %25 = vst [vmem:[#allocation5] sm:$0xf] %v24_v1 }
   0x9   :  { %36 = dma.vmem_to_hbm [thread:$0]  %s32_s12, 64, %s34_s15, [#allocation4]  }
   0xa   :  { %95 = dma.done.wait [#allocation4], 64  }
   0xb   :  { %96 = vsyncadd [#allocation4], 4294967232 }
   0xc   :  { %41 = vsyncpa [#allocation3], 1 }
   0xd   :  { %42 = vsyncpa [#allocation4], 1 }

</bundles_post_ra>
